<compile_context>
chip_gen: v6e
topology: v6e:2x2x1
jax: 0.10.0
libtpu: 0.0.40
codegen_flags: <defaults>
</compile_context>

<pallas_src>
import functools

import jax
import jax.numpy as jnp
from jax.experimental import pallas as pl
from jax.experimental.pallas import tpu as pltpu


def _se_fused_kernel(x_ref, w1_ref, b1_ref, w2_ref, b2_ref, o_ref, *, inv_hw):
    # x_ref: (Nb, C, HW); w1_ref: (SE, C); b1_ref: (1, SE); w2_ref: (C, SE);
    # b2_ref: (1, C); o_ref: (Nb, C, HW).
    # squeeze: exact global average pool, accumulated in f32 (XLU lane reduce).
    x_se = jnp.sum(x_ref[...].astype(jnp.float32), axis=-1) * inv_hw          # (Nb, C)

    # reduce 1x1 conv + swish: VPU broadcast-multiply + lane reduce.
    # (MXU deliberately avoided: Nb columns would waste the systolic array.)
    s = jnp.sum(w1_ref[...][None] * x_se[:, None, :], axis=-1) + b1_ref[...]  # (Nb, SE)
    s = s * jax.nn.sigmoid(s)                                                 # swish (EUP)

    # expand 1x1 conv + sigmoid: VPU broadcast-multiply + lane reduce.
    t = jnp.sum(w2_ref[...][None] * s[:, None, :], axis=-1) + b2_ref[...]     # (Nb, C)
    scale = jax.nn.sigmoid(t)                                                 # (Nb, C) f32

    # excite: re-read the block from VMEM here (keeps the big value's live
    # range narrow across the GEMV section) and scale in the native dtype.
    o_ref[...] = (x_ref[...] * scale[:, :, None].astype(x_ref.dtype)).astype(o_ref.dtype)


def _pool_kernel(x_ref, m_ref, *, inv_hw):
    # x_ref: (1, tc, HW) -> m_ref: (1, tc, 1) exact per-channel mean (f32).
    m_ref[...] = (jnp.sum(x_ref[...].astype(jnp.float32), axis=-1, keepdims=True)
                  * inv_hw)


def _excite_kernel(x_ref, sc_ref, o_ref):
    # x_ref: (1, tc, HW); sc_ref: (1, tc, 1) f32.
    o_ref[...] = (x_ref[...] * sc_ref[...].astype(x_ref.dtype)).astype(o_ref.dtype)


def _round_up(v, m):
    return pl.cdiv(v, m) * m


def _padded_f32_tile_bytes(rows, cols):
    # VMEM tiles pad sublanes to 8 and lanes to 128 for f32.
    return _round_up(rows, 8) * _round_up(cols, 128) * 4


def squeeze_excitation(x, w1, b1, w2, b2, *, force_two_pass=False):
    """x: (N, C, H, W); w1: (SE, C); b1: (SE,); w2: (C, SE); b2: (C,)."""
    N, C, H, W = x.shape
    SE = w1.shape[0]
    HW = H * W
    itemsize = jnp.dtype(x.dtype).itemsize
    per_sample_bytes = C * HW * itemsize

    # No HBM pad/unpad: jnp.pad / slicing around the custom call would each
    # add a full extra pass over the activation. Keep x in its native dtype
    # for HBM I/O (f32 widening would double the bytes moved on v5e too).
    x3 = x.reshape(N, C, HW)

    # Weights stay resident in VMEM (constant index_map); squeeze path is f32.
    w1f = w1.astype(jnp.float32)            # (SE, C)
    b1r = b1.astype(jnp.float32).reshape(1, SE)
    w2f = w2.astype(jnp.float32)            # (C, SE)
    b2r = b2.astype(jnp.float32).reshape(1, C)

    # ---- per-generation VMEM budget --------------------------------------
    try:
        phys_vmem = int(pltpu.get_tpu_info().vmem_capacity_bytes)
    except Exception:  # conservative default = v7x (64 MiB / TensorCore)
        phys_vmem = 64 << 20
    # Leave ~20% headroom for Mosaic internal scratch / semaphores / layout.
    vmem_cap = (phys_vmem * 4) // 5

    # Weight inputs are double-buffered by the pipeline and lane/sublane
    # padded in VMEM; account for both so the headroom math is honest at
    # large C. (pl.Buffered(1) single-buffering intentionally not used, to
    # keep the lowering on the well-trodden path.)
    weight_vmem = 2 * (_padded_f32_tile_bytes(SE, C)
                       + _padded_f32_tile_bytes(1, SE)
                       + _padded_f32_tile_bytes(C, SE)
                       + _padded_f32_tile_bytes(1, C))
    slack = 2 << 20
    act_budget = vmem_cap - weight_vmem - slack
    nb_fit = act_budget // (4 * per_sample_bytes)   # in + out, double-buffered

    cost = pl.CostEstimate(
        flops=2 * N * C * HW + 4 * N * C * SE,
        transcendentals=N * (SE + C),
        bytes_accessed=2 * N * C * HW * itemsize
        + 4 * (w1f.size + b1r.size + w2f.size + b2r.size),
    )

    if nb_fit >= 1 and not force_two_pass:
        # ---- fused single-pass path --------------------------------------
        target_block_bytes = 2 << 20
        nb = max(1, min(N, int(nb_fit),
                        max(1, target_block_bytes // per_sample_bytes)))
        if N >= 2:
            nb = min(nb, (N + 1) // 2)      # keep >= 2 grid steps (megacore)
        grid_n = pl.cdiv(N, nb)

        vmem_limit = int(min(vmem_cap,
                             max(32 << 20,
                                 4 * nb * per_sample_bytes + weight_vmem + slack)))

        out3 = pl.pallas_call(
            functools.partial(_se_fused_kernel, inv_hw=float(1.0 / HW)),
            out_shape=jax.ShapeDtypeStruct((N, C, HW), x.dtype),
            grid_spec=pltpu.PrefetchScalarGridSpec(
                num_scalar_prefetch=0,
                grid=(grid_n,),
                in_specs=[
                    pl.BlockSpec((nb, C, HW), lambda n: (n, 0, 0)),
                    pl.BlockSpec((SE, C), lambda n: (0, 0)),
                    pl.BlockSpec((1, SE), lambda n: (0, 0)),
                    pl.BlockSpec((C, SE), lambda n: (0, 0)),
                    pl.BlockSpec((1, C), lambda n: (0, 0)),
                ],
                out_specs=pl.BlockSpec((nb, C, HW), lambda n: (n, 0, 0)),
            ),
            compiler_params=pltpu.CompilerParams(
                dimension_semantics=("parallel",),
                vmem_limit_bytes=vmem_limit,
            ),
            cost_estimate=cost,
        )(x3, w1f, b1r, w2f, b2r)
        return out3.reshape(N, C, H, W)

    # ---- two-pass fallback (fused block would blow the VMEM budget) -------
    # (A) channel-tiled global average pool -> (N, C, 1) means, then the tiny
    # GEMVs on the pooled means in plain f32 JAX (negligible bytes), then
    # (B) channel-tiled excite multiply. Costs one extra HBM read of x.
    if C <= 8:
        tc = C
    else:
        tc_fit = ((vmem_cap - slack) // (4 * HW * itemsize)) // 8 * 8
        tc = int(max(8, min((C // 8) * 8, tc_fit)))
        # TODO(synk): if even a (1, 8, HW) block exceeds the budget (gigantic
        # HW), additionally tile HW with in-kernel masking of the tail block.
    grid_c = pl.cdiv(C, tc)
    fb_limit = int(min(vmem_cap, max(32 << 20, 4 * tc * HW * itemsize + (4 << 20))))

    means = pl.pallas_call(
        functools.partial(_pool_kernel, inv_hw=float(1.0 / HW)),
        out_shape=jax.ShapeDtypeStruct((N, C, 1), jnp.float32),
        grid_spec=pltpu.PrefetchScalarGridSpec(
            num_scalar_prefetch=0,
            grid=(N, grid_c),
            in_specs=[pl.BlockSpec((1, tc, HW), lambda n, c: (n, c, 0))],
            out_specs=pl.BlockSpec((1, tc, 1), lambda n, c: (n, c, 0)),
        ),
        compiler_params=pltpu.CompilerParams(
            dimension_semantics=("parallel", "parallel"),
            vmem_limit_bytes=fb_limit,
        ),
    )(x3)

    m2 = means[..., 0]                                                     # (N, C)
    s = jnp.dot(m2, w1f.T, precision=jax.lax.Precision.HIGHEST) + b1r      # (N, SE)
    s = s * jax.nn.sigmoid(s)
    t = jnp.dot(s, w2f.T, precision=jax.lax.Precision.HIGHEST) + b2r       # (N, C)
    scale = jax.nn.sigmoid(t).reshape(N, C, 1)                             # f32

    out3 = pl.pallas_call(
        _excite_kernel,
        out_shape=jax.ShapeDtypeStruct((N, C, HW), x.dtype),
        grid_spec=pltpu.PrefetchScalarGridSpec(
            num_scalar_prefetch=0,
            grid=(N, grid_c),
            in_specs=[
                pl.BlockSpec((1, tc, HW), lambda n, c: (n, c, 0)),
                pl.BlockSpec((1, tc, 1), lambda n, c: (n, c, 0)),
            ],
            out_specs=pl.BlockSpec((1, tc, HW), lambda n, c: (n, c, 0)),
        ),
        compiler_params=pltpu.CompilerParams(
            dimension_semantics=("parallel", "parallel"),
            vmem_limit_bytes=fb_limit,
        ),
        cost_estimate=cost,
    )(x3, scale)
    return out3.reshape(N, C, H, W)


def _reference(x, w1, b1, w2, b2):
    x_se = jnp.mean(x, axis=(-2, -1), keepdims=True)          # (N, C, 1, 1)
    s = jnp.einsum("oc,nchw->nohw", w1, x_se,
                   precision=jax.lax.Precision.HIGHEST) + b1[None, :, None, None]
    s = s * jax.nn.sigmoid(s)
    t = jnp.einsum("co,nohw->nchw", w2, s,
                   precision=jax.lax.Precision.HIGHEST) + b2[None, :, None, None]
    t = jax.nn.sigmoid(t)
    return t * x


if __name__ == "__main__":
    key = jax.random.PRNGKey(0)
    k_x, k_w1, k_b1, k_w2, k_b2 = jax.random.split(key, 5)

    N, C, H, W = 2, 4, 16, 16
    SE = 2  # se_planes

    x = jax.random.normal(k_x, (N, C, H, W), dtype=jnp.float32)
    # Conv2d(in_planes, se_planes, 1): weight (SE, C, 1, 1) -> (SE, C)
    w1 = 0.1 * jax.random.normal(k_w1, (SE, C), dtype=jnp.float32)
    b1 = 0.1 * jax.random.normal(k_b1, (SE,), dtype=jnp.float32)
    # Conv2d(se_planes, in_planes, 1): weight (C, SE, 1, 1) -> (C, SE)
    w2 = 0.1 * jax.random.normal(k_w2, (C, SE), dtype=jnp.float32)
    b2 = 0.1 * jax.random.normal(k_b2, (C,), dtype=jnp.float32)

    ref = _reference(x, w1, b1, w2, b2)

    # Fused single-pass path (default).
    out = jax.block_until_ready(squeeze_excitation(x, w1, b1, w2, b2))
    assert out.shape == ref.shape
    assert jnp.allclose(out, ref, atol=1e-5, rtol=1e-5)

    # Two-pass fallback path (used when the fused block exceeds the VMEM cap).
    out2 = jax.block_until_ready(
        squeeze_excitation(x, w1, b1, w2, b2, force_two_pass=True))
    assert jnp.allclose(out2, ref, atol=1e-5, rtol=1e-5)

    print("KERNEL_OK")
</pallas_src>

<mosaic_0001>
module attributes {stable_mosaic.version = 11 : i64} {
  func.func @_se_fused_kernel(%arg0: i32, %arg1: memref<1x4x256xf32, #tpu.memory_space<vmem>>, %arg2: memref<2x4xf32, #tpu.memory_space<vmem>>, %arg3: memref<1x2xf32, #tpu.memory_space<vmem>>, %arg4: memref<4x2xf32, #tpu.memory_space<vmem>>, %arg5: memref<1x4xf32, #tpu.memory_space<vmem>>, %arg6: memref<1x4x256xf32, #tpu.memory_space<vmem>>) attributes {dimension_semantics = [#tpu.dimension_semantics<parallel>], iteration_bounds = array<i64: 2>, scalar_prefetch = 0 : i64, scratch_operands = 0 : i64, tpu.core_type = #tpu.core_type<tc>, window_params = [{transform_indices = @transform_0, window_bounds = array<i64: 1, 4, 256>}, {pipeline_mode = #tpu.pipeline_mode<synchronous>, transform_indices = @transform_1, window_bounds = array<i64: 2, 4>}, {pipeline_mode = #tpu.pipeline_mode<synchronous>, transform_indices = @transform_2, window_bounds = array<i64: 1, 2>}, {pipeline_mode = #tpu.pipeline_mode<synchronous>, transform_indices = @transform_3, window_bounds = array<i64: 4, 2>}, {pipeline_mode = #tpu.pipeline_mode<synchronous>, transform_indices = @transform_4, window_bounds = array<i64: 1, 4>}, {transform_indices = @transform_5, window_bounds = array<i64: 1, 4, 256>}]} {
    %c0 = arith.constant 0 : index
    %c0_0 = arith.constant 0 : index
    %c0_1 = arith.constant 0 : index
    %0 = vector.load %arg1[%c0, %c0_0, %c0_1] : memref<1x4x256xf32, #tpu.memory_space<vmem>>, vector<1x4x256xf32>
    %cst = arith.constant dense<0.000000e+00> : vector<1x4xf32>
    %1 = vector.multi_reduction <add>, %0, %cst [2] : vector<1x4x256xf32> to vector<1x4xf32>
    %cst_2 = arith.constant 3.906250e-03 : f32
    %2 = vector.broadcast %cst_2 : f32 to vector<1x4xf32>
    %3 = arith.mulf %1, %2 : vector<1x4xf32>
    %c0_3 = arith.constant 0 : index
    %c0_4 = arith.constant 0 : index
    %4 = vector.load %arg2[%c0_3, %c0_4] : memref<2x4xf32, #tpu.memory_space<vmem>>, vector<2x4xf32>
    %5 = vector.shape_cast %4 : vector<2x4xf32> to vector<1x2x4xf32>
    %6 = vector.shape_cast %3 : vector<1x4xf32> to vector<1x1x4xf32>
    %7 = vector.broadcast %6 : vector<1x1x4xf32> to vector<1x2x4xf32>
    %8 = arith.mulf %5, %7 : vector<1x2x4xf32>
    %cst_5 = arith.constant dense<0.000000e+00> : vector<1x2xf32>
    %9 = vector.multi_reduction <add>, %8, %cst_5 [2] : vector<1x2x4xf32> to vector<1x2xf32>
    %c0_6 = arith.constant 0 : index
    %c0_7 = arith.constant 0 : index
    %10 = vector.load %arg3[%c0_6, %c0_7] : memref<1x2xf32, #tpu.memory_space<vmem>>, vector<1x2xf32>
    %11 = arith.addf %9, %10 : vector<1x2xf32>
    %12 = arith.negf %11 : vector<1x2xf32>
    %13 = math.exp %12 : vector<1x2xf32>
    %cst_8 = arith.constant 1.000000e+00 : f32
    %14 = vector.broadcast %cst_8 : f32 to vector<1x2xf32>
    %15 = arith.addf %14, %13 : vector<1x2xf32>
    %16 = arith.divf %14, %15 : vector<1x2xf32>
    %17 = arith.mulf %11, %16 : vector<1x2xf32>
    %c0_9 = arith.constant 0 : index
    %c0_10 = arith.constant 0 : index
    %18 = vector.load %arg4[%c0_9, %c0_10] : memref<4x2xf32, #tpu.memory_space<vmem>>, vector<4x2xf32>
    %19 = vector.shape_cast %18 : vector<4x2xf32> to vector<1x4x2xf32>
    %20 = vector.shape_cast %17 : vector<1x2xf32> to vector<1x1x2xf32>
    %21 = vector.broadcast %20 : vector<1x1x2xf32> to vector<1x4x2xf32>
    %22 = arith.mulf %19, %21 : vector<1x4x2xf32>
    %cst_11 = arith.constant dense<0.000000e+00> : vector<1x4xf32>
    %23 = vector.multi_reduction <add>, %22, %cst_11 [2] : vector<1x4x2xf32> to vector<1x4xf32>
    %c0_12 = arith.constant 0 : index
    %c0_13 = arith.constant 0 : index
    %24 = vector.load %arg5[%c0_12, %c0_13] : memref<1x4xf32, #tpu.memory_space<vmem>>, vector<1x4xf32>
    %25 = arith.addf %23, %24 : vector<1x4xf32>
    %26 = arith.negf %25 : vector<1x4xf32>
    %27 = math.exp %26 : vector<1x4xf32>
    %cst_14 = arith.constant 1.000000e+00 : f32
    %28 = vector.broadcast %cst_14 : f32 to vector<1x4xf32>
    %29 = arith.addf %28, %27 : vector<1x4xf32>
    %30 = arith.divf %28, %29 : vector<1x4xf32>
    %c0_15 = arith.constant 0 : index
    %c0_16 = arith.constant 0 : index
    %c0_17 = arith.constant 0 : index
    %31 = vector.load %arg1[%c0_15, %c0_16, %c0_17] : memref<1x4x256xf32, #tpu.memory_space<vmem>>, vector<1x4x256xf32>
    %32 = vector.shape_cast %30 : vector<1x4xf32> to vector<1x4x1xf32>
    %33 = vector.broadcast %32 : vector<1x4x1xf32> to vector<1x4x256xf32>
    %34 = arith.mulf %31, %33 : vector<1x4x256xf32>
    %c0_18 = arith.constant 0 : index
    %c0_19 = arith.constant 0 : index
    %c0_20 = arith.constant 0 : index
    %35 = vector.load %arg6[%c0_18, %c0_19, %c0_20] : memref<1x4x256xf32, #tpu.memory_space<vmem>>, vector<1x4x256xf32>
    tpu.vector_store %arg6[%c0_18, %c0_19, %c0_20], %34 {strides = array<i32>} : memref<1x4x256xf32, #tpu.memory_space<vmem>>, vector<1x4x256xf32>,
    return
  }
  func.func @transform_0(%arg0: i32) -> (i32, i32, i32) {
    %c0_i32 = arith.constant 0 : i32
    %c0_i32_0 = arith.constant 0 : i32
    %c0_i32_1 = arith.constant 0 : i32
    return %arg0, %c0_i32, %c0_i32_0 : i32, i32, i32
  }
  func.func @transform_1(%arg0: i32) -> (i32, i32) {
    %c0_i32 = arith.constant 0 : i32
    %c0_i32_0 = arith.constant 0 : i32
    %c0_i32_1 = arith.constant 0 : i32
    return %c0_i32, %c0_i32_0 : i32, i32
  }
  func.func @transform_2(%arg0: i32) -> (i32, i32) {
    %c0_i32 = arith.constant 0 : i32
    %c0_i32_0 = arith.constant 0 : i32
    %c0_i32_1 = arith.constant 0 : i32
    return %c0_i32, %c0_i32_0 : i32, i32
  }
  func.func @transform_3(%arg0: i32) -> (i32, i32) {
    %c0_i32 = arith.constant 0 : i32
    %c0_i32_0 = arith.constant 0 : i32
    %c0_i32_1 = arith.constant 0 : i32
    return %c0_i32, %c0_i32_0 : i32, i32
  }
  func.func @transform_4(%arg0: i32) -> (i32, i32) {
    %c0_i32 = arith.constant 0 : i32
    %c0_i32_0 = arith.constant 0 : i32
    %c0_i32_1 = arith.constant 0 : i32
    return %c0_i32, %c0_i32_0 : i32, i32
  }
  func.func @transform_5(%arg0: i32) -> (i32, i32, i32) {
    %c0_i32 = arith.constant 0 : i32
    %c0_i32_0 = arith.constant 0 : i32
    %c0_i32_1 = arith.constant 0 : i32
    return %arg0, %c0_i32, %c0_i32_0 : i32, i32, i32
  }
}

</mosaic_0001>

<bundles_post_ra>
// kernel: tpu_custom_call.1
= control target key start
LH: loop header
LB: loop body
LE: loop exit
PB: predicated region body
PF: predicated region fallthrough
CT: control target
= control target key end

     0   :  { %10 = vsyncpa [#allocation3], 0  ;;  %s783_s0 = inlined_call_operand.hbm [shape: f32[2,4,256], index: 0, kind: input, shape index: {}]   ;;  %s784_s1 = inlined_call_operand.vmem [shape: f32[2,4], index: 1, kind: input, shape index: {}]   ;;  %s785_s2 = inlined_call_operand.vmem [shape: f32[1,2], index: 2, kind: input, shape index: {}]   ;;  %s786_s3 = inlined_call_operand.vmem [shape: f32[4,2], index: 3, kind: input, shape index: {}]   ;;  %s787_s4 = inlined_call_operand.vmem [shape: f32[1,4], index: 4, kind: input, shape index: {}]   ;;  %s788_s5 = inlined_call_operand.hbm [shape: f32[2,4,256], index: 5, kind: output, shape index: {}]  }
   0x1   :  { %12 = vsyncpa [#allocation3 + $0x1], 0 }
   0x2   :  { %13 = vsyncpa [#allocation4], 0 }
   0x3   :  { %15 = vsyncpa [#allocation4 + $0x1], 0  ;;  %s626_s18 = smov 0   ;;  %s628_s19 = smov 0  }
   0x4   :  { %s630_s20 = smov 0   ;;  %s632_s21 = smov 0  }
   0x5 LB: > { %s647_s22 = sadd.s32 4294967295, %s590_s21   ;;  %s419_s23 = sadd.s32 4294967294, %s590_s21   ;;  %s590_s21 = sphi %s632_s21, %s805_s21   ;;  %s586_s20 = sphi %s630_s20, %s804_s20   ;;  %s582_s19 = sphi %s628_s19, %s803_s19   ;;  %s578_s18 = sphi %s626_s18, %s802_s18  }
   0x6   : > { %s651_s24 = sadd.s32 1, %s590_s21   ;;  %s28_s25 = sadd.s32 1, %s586_s20 }
   0x7   : > { %s25_s26 = ssub.s32 %s590_s21, %s651_s24  ;;  %p35_p0 = scmp.ne.s32.totalorder %s586_s20, %s582_s19 }
   0x8   : > { %p26_p1 = scmp.eq.s32.totalorder %s25_s26, 0  ;;  %p36_p2 = scmp.eq.s32.totalorder %s590_s21, 0 }
   0x9   : > { %p41_p3 = scmp.ne.s32.totalorder %s582_s19, %s578_s18  ;;  %p42_p4 = scmp.eq.s32.totalorder %s647_s22, 0 }
   0xa   : > { %s663_s27 = scalar_select %p26_p1, %s586_s20, %s28_s25  }
   0xb   : > { %p665_p5 = por %p36_p2, %p35_p0  ;;  %p669_p6 = por %p42_p4, %p41_p3 }
   0xc   : > { %p149_p7 = scmp.eq.s32.totalorder %s647_s22, 1  ;;  %p155_p8 = scmp.eq.s32.totalorder %s419_s23, 1 }
   0xd   : > { %s792_s29 = scalar_select %p669_p6, 1, 0 }
   0xe   : > { %p451_p10 = scmp.lt.s32.totalorder %s590_s21, 2  ;;  %p676_p11 = por %p149_p7, %p35_p0 }
   0xf   : > { %p680_p12 = por %p155_p8, %p41_p3  ;;  %s187_s7 = sand.u32 1, %s586_s20  }
  0x10   : > { %s793_s30 = scalar_select %p676_p11, 1, 0 }
  0x11   : > { %s794_s6 = scalar_select %p680_p12, 1, 0 }
  0x12   : > { %s437_s8 = sshll.u32 %s590_s21, 7  ;;  %s422_s9 = sshll.u32 %s187_s7, 3 }
  0x13   : > { %s689_s12 = scalar_lea.hbm %s783_s0, %s437_s8  ;;  %s191_s13 = scalar_lea.vmem [#allocation2], %s422_s9 }
  0x14   : > { %s199_s14 = sshll.u32 %s191_s13, 4  ;;  %p693_p13 = pnand %p451_p10, %p665_p5  ;;  %s697_s14 = int_to_ptr.vmem [resolvable:$true] %s199_s14 }
  0x15   : > { %s188_s16 = scalar_lea.sflag [#allocation3], %s187_s7  ;;  %s498_s17 = scalar_lea.hbm %s689_s12, 128 }
  0x16   : > { %p499_p2 = scmp.ne.s32.totalorder %s689_s12, %s498_s17  ;;  %p500_p3 = pneg %p693_p13 }
  0x17   : > { %s503_s26 = scalar_lea.hbm %s783_s0, 256  ;;  %p504_p5 = scmp.lt.s32.totalorder %s689_s12, %s783_s0 }
  0x18   : > { %p501_p4 = pnand %p500_p3, %p499_p2  ;;  %p505_p8 = scmp.lt.s32.totalorder %s503_s26, %s498_s17 }
  0x1a   : > { %p502_p7 = pneg %p501_p4  ;;  %p506_p10 = por %p505_p8, %p504_p5 }
  0x1c   : > { %p507_p9 = pnand %p506_p10, %p502_p7 }
  0x1e   : > { %510 = shalt.err (!%p507_p9)
}
  0x1f   : > { %s511_s7 = scalar_lea.vmem %s697_s14, 128  ;;  %s592_s9 = smov [#allocation2]  }
  0x20   : > { %p512_p0 = scmp.ne.s32.totalorder %s697_s14, %s511_s7  ;;  %s516_s10 = sshll.u32 %s592_s9, 4  ;;  %s517_s10 = int_to_ptr.vmem [resolvable:$false] %s516_s10 }
  0x21   : > { %s518_s11 = scalar_lea.vmem %s517_s10, 256  ;;  %p519_p4 = scmp.lt.s32.totalorder %s697_s14, %s517_s10 }
  0x22   : > { %p514_p1 = pnand %p512_p0, %p500_p3  ;;  %p520_p12 = scmp.lt.s32.totalorder %s518_s11, %s511_s7 }
  0x24   : > { %p515_p2 = pneg %p514_p1  ;;  %p521_p11 = por %p520_p12, %p519_p4 }
  0x26   : > { %p522_p6 = pnand %p521_p11, %p515_p2 }
  0x28   : > { %525 = shalt.err (!%p522_p6)
}
  0x29   : > { %446 = dma.hbm_to_vmem [thread:$0]  (!%p693_p13), %s689_s12, 128, %s697_s14, %s188_s16  }
  0x2a   : > { %p796_p9 = scmp.lt.s32.totalorder %s590_s21, 3  ;;  %p797_p7 = scmp.ge.s32.totalorder %s590_s21, 1 }
  0x2c   : > { %p205_p0 = pnand %p797_p7, %p796_p9 }
  0x2d   : > { %s724_s13 = sand.u32 (!%p205_p0), 1, %s582_s19   ;;  %p798_p6 = scmp.ne.s32.totalorder (!%p205_p0), %s792_s29, 0 }
  0x2e   : > { %208 = sbr.rel (%p205_p0) target bundleno = 819 (0x333), region = 40  ;;  %s426_s17 = sshll.u32 (!%p205_p0), %s724_s13, 3 }
  0x2f   : > { %s211_s23 = scalar_lea.sflag (!%p205_p0), [#allocation3], %s724_s13  ;;  %s214_s15 = scalar_lea.vmem (!%p205_p0), [#allocation2], %s426_s17 }
  0x33   : > { %569 = dma.done.wait (%p798_p6), %s211_s23, 128  }
  0x34   : > { %571 = vsyncadd (%p798_p6), %s211_s23, 4294967168  ;;  %vm245_vm0 = vcmask 1043456   ;;  %v241_v0 = vld [vmem:[%s214_s15] sm:$0xff]  ;;  %v254_v6 = vlaneseq  ;;  %vm262_vm1 = vcmask 25600   ;;  %v593_v16 = vmov 0   ;;  %s438_s7 = sshll.u32 %s647_s22, 7 }
  0x35   : > { %v243_v1 = vcombine.high %v241_v0, %v241_v0  ;;  %v246_v2 = vsel %vm245_vm0, %v241_v0, 0.0  ;;  %v428_v5 = vld [vmem:[%s785_s2] ss:$0 sm:$0xff]  ;;  %487 = vset.pattern.permute.xlu1 %v593_v16  ;;  %488 = vset.pattern.permute.xlu0 %v593_v16  ;;  %vm299_vm2 = vcmask 11264   ;;  %v594_v38 = vmov 839922192   ;;  %s347_s15 = scalar_lea.hbm %s788_s5, %s438_s7 }
  0x36   : > { %273 = vbcast.lane.b32.xlu1 %v428_v5, 256  ;;  %v255_v7 = vand.u32 127, %v254_v6  ;;  %v257_v8 = vshrl.u32 %v254_v6, 7  ;;  %v252_v12 = vld [vmem:[%s784_s1] sm:$0x3]  ;;  %v325_v39 = vunpack.c.l.s4 %v594_v38  ;;  %s240_s9 = scalar_lea.vmem [#allocation5], %s426_s17 }
  0x37   : > { %v247_v3 = vsel %vm245_vm0, %v243_v1, 0.0  ;;  %v430_v25 = vld [vmem:[%s787_s4] ss:$0 sm:$0xff]  ;;  %s349_s10 = sshll.u32 %s240_s9, 4  ;;  %s335_s12 = scalar_lea.sflag [#allocation4], %s724_s13  ;;  %s350_s10 = int_to_ptr.vmem [resolvable:$true] %s349_s10 }
  0x38   : > { %v248_v4 = vadd.f32 %v247_v3, %v246_v2  ;;  %v258_v9 = vsub.s32 %v255_v7, %v257_v8  ;;  %v284_v27 = vld [vmem:[%s786_s3] sm:$0xf]  ;;  %v326_v40 = vunpack.c.0.s8 %v325_v39  ;;  %s526_s14 = scalar_lea.vmem %s350_s10, 128  ;;  %p799_p12 = scmp.ne.s32.totalorder %s793_s30, 0 }
  0x39   : > { %p527_p11 = scmp.ne.s32.totalorder %s350_s10, %s526_s14  ;;  %s595_s29 = smov [#allocation5]  }
  0x3a   : > { %249 = vadd.xlane.f32.xlu0 %v248_v4  ;;  %v329_v41 = vsub.s32 %v326_v40, %v257_v8  ;;  %s530_s16 = sshll.u32 %s595_s29, 4  ;;  %s531_s16 = int_to_ptr.vmem [resolvable:$false] %s530_s16 }
  0x3b   : > { %p528_p13 = pnand %p527_p11, %p799_p12  ;;  %s532_s22 = scalar_lea.vmem %s531_s16, 256 }
  0x3c   : > { %p533_p3 = scmp.lt.s32.totalorder %s350_s10, %s531_s16  ;;  %p534_p5 = scmp.lt.s32.totalorder %s532_s22, %s526_s14 }
  0x3d   : > { %p529_p1 = pneg %p528_p13 }
  0x3e   : > { %p535_p8 = por %p534_p5, %p533_p3 }
  0x40   : > { %p536_p10 = pnand %p535_p8, %p529_p1 }
  0xa8   : > { %v274_v17 = vpop.permute.xlu1 %273 }
  0xc3   : > { %v250_v10 = vpop.xlane.xlu0 %249 }
  0xc4   : > { %v251_v11 = vmul.f32 0.00390625, %v250_v10 }
  0xc6   : > { %v259_v13 = vrot.slane %v251_v11, %v258_v9 }
  0xc8   : > { %v261_v14 = vmul.f32 %v259_v13, %v252_v12 }
  0xca   : > { %v263_v15 = vsel %vm262_vm1, %v261_v14, 0.0 }
  0xcb   : > { %264 = vadd.xlane.f32.xlu0 %v263_v15 }
 0x154   : > { %v265_v18 = vpop.xlane.xlu0 %264 }
 0x155   : > { %v276_v19 = vadd.f32 %v274_v17, %v265_v18 }
 0x157   : > { %v429_v20 = vmul.f32 -1.442695, %v276_v19 }
 0x159   : > { %490 = vpow2.f32 %v429_v20 }
 0x166   : > { %v491_v21 = vpop.eup %490 }
 0x167   : > { %v280_v22 = vadd.f32 1.0, %v491_v21 }
 0x169   : > { %492 = vrcp.f32 %v280_v22 }
 0x176   : > { %v493_v23 = vpop.eup %492 }
 0x177   : > { %v283_v24 = vmul.f32 %v493_v23, %v276_v19 }
 0x179   : > { %287 = vperm.xlu1 %487, %v283_v24  }
 0x17d   : > { %310 = vbcast.lane.b32.xlu1 %v430_v25, 256 }
 0x1f4   : > { %v288_v26 = vpop.permute.xlu1 %287 }
 0x1f5   : > { %v292_v28 = vrot.slane %v288_v26, %v258_v9 }
 0x1f7   : > { %v298_v29 = vmul.f32 %v292_v28, %v284_v27 }
 0x1f8   : > { %v311_v31 = vpop.permute.xlu1 %310 }
 0x1f9   : > { %v300_v30 = vsel %vm299_vm2, %v298_v29, 0.0 }
 0x1fa   : > { %301 = vadd.xlane.f32.xlu0 %v300_v30 }
 0x283   : > { %v302_v32 = vpop.xlane.xlu0 %301 }
 0x284   : > { %v313_v33 = vadd.f32 %v311_v31, %v302_v32 }
 0x286   : > { %v431_v34 = vmul.f32 -1.442695, %v313_v33 }
 0x288   : > { %494 = vpow2.f32 %v431_v34 }
 0x295   : > { %v495_v35 = vpop.eup %494 }
 0x296   : > { %v317_v36 = vadd.f32 1.0, %v495_v35 }
 0x298   : > { %496 = vrcp.f32 %v317_v36 }
 0x2a5   : > { %v497_v37 = vpop.eup %496 }
 0x2a6   : > { %322 = vperm.xlu0 %488, %v497_v37  }
 0x321   : > { %v323_v42 = vpop.permute.xlu0 %322 }
 0x322   : > { %v330_v43 = vrot.slane %v323_v42, %v329_v41 }
 0x324   : > { %v332_v44 = vmul.f32 %v330_v43, %v241_v0 }
 0x326   : > { %333 = vst [vmem:[%s240_s9] sm:$0xff] %v332_v44 }
 0x327   : > { %539 = shalt.err (!%p536_p10)
}
 0x328   : > { %s540_s17 = scalar_lea.hbm %s347_s15, 128  ;;  %s544_s26 = scalar_lea.hbm %s788_s5, 256 }
 0x329   : > { %p541_p2 = scmp.ne.s32.totalorder %s347_s15, %s540_s17  ;;  %p545_p7 = scmp.lt.s32.totalorder %s347_s15, %s788_s5 }
 0x32a   : > { %p546_p0 = scmp.lt.s32.totalorder %s544_s26, %s540_s17 }
 0x32b   : > { %p542_p4 = pnand %p541_p2, %p799_p12 }
 0x32c   : > { %p547_p6 = por %p546_p0, %p545_p7 }
 0x32d   : > { %p543_p9 = pneg %p542_p4 }
 0x32f   : > { %p548_p11 = pnand %p547_p6, %p543_p9 }
 0x331   : > { %551 = shalt.err (!%p548_p11)
}
 0x332   : > { %441 = dma.vmem_to_hbm [thread:$0]  (%p799_p12), %s350_s10, 128, %s347_s15, %s335_s12  }
 0x333 PF: > { %s361_s7 = sand.u32 1, %s578_s18   ;;  %p800_p13 = scmp.ne.s32.totalorder %s794_s6, 0 }
 0x334   : > { %p801_p1 = scmp.ge.s32.totalorder %s590_s21, 2  ;;  %s362_s9 = scalar_lea.sflag [#allocation4], %s361_s7 }
 0x336   : > { %p448_p3 = pnand %p801_p1, %p800_p13 }
 0x338   : > { %p449_p5 = pneg %p448_p3 }
 0x33a   : > { %573 = dma.done.wait (%p449_p5), %s362_s9, 128  }
 0x33b   : > { %575 = vsyncadd (%p449_p5), %s362_s9, 4294967168  ;;  %p18_p8 = scmp.ge.s32.totalorder %s651_s24, 4   ;;  %s802_s18 = smov %s582_s19 }
 0x33c   : > { %s803_s19 = smov %s586_s20  ;;  %s804_s20 = smov %s663_s27 }
 0x33d   : > { %s805_s21 = smov %s651_s24  ;;  %20 = sbr.rel (!%p18_p8) target bundleno = 5 (0x5), region = 85 }
 0x342   :  { %367 = vsyncpa [#allocation3], 1 }
 0x343   :  { %369 = vsyncpa [#allocation3 + $0x1], 1 }
 0x344   :  { %370 = vsyncpa [#allocation4], 1 }
 0x345   :  { %372 = vsyncpa [#allocation4 + $0x1], 1 }

</bundles_post_ra>
